<compile_context>
chip_gen: v7x
topology: tpu7x:2x2x1
jax: 0.10.0
libtpu: 0.0.40
codegen_flags: <defaults>
</compile_context>

<pallas_src>
import functools
import math

import jax
import jax.numpy as jnp
from jax.experimental import pallas as pl
from jax.experimental.pallas import tpu as pltpu


# ---------------------------------------------------------------------------
# Fused Pallas kernel: grid axis = conv layer index
# ---------------------------------------------------------------------------

def _gcnii_fused_kernel(betas_ref, a_ref, x_ref, w_in_ref, b_in_ref, w_ref,
                        w_out_ref, b_out_ref, o_ref, h_scr, h0_scr, *,
                        alpha, num_layers):
    l = pl.program_id(0)

    # Layer 0: fused input Linear + ReLU, seed the VMEM-resident h / h0 state.
    @pl.when(l == 0)
    def _():
        h_in = jnp.dot(x_ref[...], w_in_ref[...],
                       preferred_element_type=jnp.float32)
        h_in = jnp.maximum(h_in + b_in_ref[...], 0.0)
        h_scr[...] = h_in
        h0_scr[...] = h_in

    beta = betas_ref[l]  # scalar f32 read from SMEM

    # GraphConvII: aggregate, initial residual, identity mapping, ReLU.
    # Matmul operands are fed to the MXU in bf16; accumulation + all
    # elementwise math stay in f32.
    h_bf = h_scr[...].astype(jnp.bfloat16)
    agg = jnp.dot(a_ref[...], h_bf, preferred_element_type=jnp.float32)
    # (1 - alpha) * agg + alpha * h0  ==  agg + alpha * (h0 - agg)
    support = agg + alpha * (h0_scr[...] - agg)
    sw = jnp.dot(support.astype(jnp.bfloat16), w_ref[...],
                 preferred_element_type=jnp.float32)
    # beta * sw + (1 - beta) * support  ==  support + beta * (sw - support)
    h_new = jnp.maximum(support + beta * (sw - support), 0.0)
    h_scr[...] = h_new

    # Last layer: fused output Linear; single lane-dense store of the result.
    @pl.when(l == num_layers - 1)
    def _():
        out = jnp.dot(h_new.astype(jnp.bfloat16), w_out_ref[...],
                      preferred_element_type=jnp.float32)
        o_ref[...] = (out + b_out_ref[...]).astype(o_ref.dtype)


# ---------------------------------------------------------------------------
# Wrapper: padding + single pallas_call
# ---------------------------------------------------------------------------

def _round_up(x, m):
    return ((x + m - 1) // m) * m


def _pad2(x, rows, cols):
    return jnp.pad(x, ((0, rows - x.shape[0]), (0, cols - x.shape[1])))


def gcnii_forward(params, a_hat, features, *, alpha, lamda):
    N, f_in = features.shape
    f_hid = params["w_in"].shape[0]
    f_out = params["w_out"].shape[0]
    num_layers = len(params["conv_ws"])
    assert num_layers >= 1

    # Pad lane dims to 128 (covers sublane 8 too); padded rows/cols of A_hat
    # and all weights are zero so the valid output slice is unaffected.
    n_pad = _round_up(N, 128)
    fin_pad = _round_up(f_in, 128)
    fh_pad = _round_up(f_hid, 128)
    fo_pad = _round_up(f_out, 128)

    bf16 = jnp.bfloat16
    a_pad = _pad2(a_hat, n_pad, n_pad).astype(bf16)
    x_pad = _pad2(features, n_pad, fin_pad).astype(bf16)
    w_in_pad = _pad2(params["w_in"].T, fin_pad, fh_pad).astype(bf16)   # [Fin_pad, Fh_pad]
    b_in_pad = _pad2(params["b_in"], 1, fh_pad)                        # f32 [1, Fh_pad]
    conv_w = jnp.stack(
        [_pad2(w, fh_pad, fh_pad) for w in params["conv_ws"]]).astype(bf16)
    w_out_pad = _pad2(params["w_out"].T, fh_pad, fo_pad).astype(bf16)  # [Fh_pad, Fo_pad]
    b_out_pad = _pad2(params["b_out"], 1, fo_pad)                      # f32 [1, Fo_pad]

    # Compile/host-time beta constants (no device ops at trace time).
    betas = jnp.asarray(
        [math.log(lamda / (i + 1) + 1.0) for i in range(num_layers)],
        jnp.float32)

    # ----- VMEM budget (single-buffered constants, double-buffered conv_w) ---
    bytes_a = n_pad * n_pad * 2
    bytes_x = n_pad * fin_pad * 2
    bytes_w_in = fin_pad * fh_pad * 2
    bytes_b_in = fh_pad * 4
    bytes_conv_tile = fh_pad * fh_pad * 2
    bytes_conv_all = num_layers * bytes_conv_tile
    bytes_w_out = fh_pad * fo_pad * 2
    bytes_b_out = fo_pad * 4
    bytes_out = n_pad * fo_pad * 4
    bytes_scratch = 2 * n_pad * fh_pad * 4

    vmem_need = (bytes_a + bytes_x + bytes_w_in + bytes_b_in
                 + 2 * bytes_conv_tile         # streamed weight, double buffer
                 + bytes_w_out + bytes_b_out + bytes_out + bytes_scratch)
    # ~25% headroom for compiler temps; floor 32 MiB; cap 64 MiB (v7x-safe).
    vmem_limit = int(min(max(vmem_need * 1.25, 32 * 2**20), 64 * 2**20))

    # ----- advisory cost estimate for XLA scheduling --------------------------
    flops = (2 * n_pad * fin_pad * fh_pad
             + num_layers * (2 * n_pad * n_pad * fh_pad
                             + 2 * n_pad * fh_pad * fh_pad)
             + 2 * n_pad * fh_pad * fo_pad)
    bytes_accessed = (bytes_a + bytes_x + bytes_w_in + bytes_b_in
                      + bytes_conv_all + bytes_w_out + bytes_b_out
                      + bytes_out + betas.size * 4)
    cost = pl.CostEstimate(flops=int(flops), transcendentals=0,
                           bytes_accessed=int(bytes_accessed))

    kernel = functools.partial(_gcnii_fused_kernel,
                               alpha=float(alpha), num_layers=num_layers)

    single = pl.Buffered(buffer_count=1)   # constant-index blocks: one buffer

    out_pad = pl.pallas_call(
        kernel,
        out_shape=jax.ShapeDtypeStruct((n_pad, fo_pad), jnp.float32),
        grid_spec=pltpu.PrefetchScalarGridSpec(
            num_scalar_prefetch=0,
            grid=(num_layers,),
            in_specs=[
                # per-layer beta scalars, resident in SMEM
                pl.BlockSpec(memory_space=pltpu.MemorySpace.SMEM),
                # A_hat / X / dense weights: constant block index -> loaded
                # once, single-buffered (halves their VMEM footprint).
                pl.BlockSpec((n_pad, n_pad), lambda l: (0, 0),
                             pipeline_mode=single),
                pl.BlockSpec((n_pad, fin_pad), lambda l: (0, 0),
                             pipeline_mode=single),
                pl.BlockSpec((fin_pad, fh_pad), lambda l: (0, 0),
                             pipeline_mode=single),
                pl.BlockSpec((1, fh_pad), lambda l: (0, 0),
                             pipeline_mode=single),
                # stacked conv weights, streamed one layer per grid step
                # (default double buffering hides the DMA behind A_hat @ h;
                # sweep pl.Buffered(3) for many-layer / tiny-tile configs).
                pl.BlockSpec((pl.Squeezed(), fh_pad, fh_pad),
                             lambda l: (l, 0, 0)),
                pl.BlockSpec((fh_pad, fo_pad), lambda l: (0, 0),
                             pipeline_mode=single),
                pl.BlockSpec((1, fo_pad), lambda l: (0, 0),
                             pipeline_mode=single),
            ],
            out_specs=pl.BlockSpec((n_pad, fo_pad), lambda l: (0, 0),
                                   pipeline_mode=single),
            scratch_shapes=[
                pltpu.VMEM((n_pad, fh_pad), jnp.float32),   # h
                pltpu.VMEM((n_pad, fh_pad), jnp.float32),   # h0
            ],
        ),
        compiler_params=pltpu.CompilerParams(
            # Layer axis carries the h state -> sequential.
            dimension_semantics=("arbitrary",),
            vmem_limit_bytes=vmem_limit,
        ),
        cost_estimate=cost,
    )(betas, a_pad, x_pad, w_in_pad, b_in_pad, conv_w, w_out_pad, b_out_pad)

    return out_pad[:N, :f_out]


# ---------------------------------------------------------------------------
# Pure-JAX references (for in-script correctness check)
# ---------------------------------------------------------------------------

def gcnii_reference(params, a_hat, features, *, alpha, lamda,
                    emulate_bf16=True):
    """If emulate_bf16, mimic the kernel's bf16 operand storage exactly
    (bf16 matmul operands, f32 accumulation, f32 elementwise math)."""
    cast = (lambda t: t.astype(jnp.bfloat16)) if emulate_bf16 else (lambda t: t)
    dot = functools.partial(jnp.dot, preferred_element_type=jnp.float32)

    h = jnp.maximum(dot(cast(features), cast(params["w_in"].T))
                    + params["b_in"], 0.0)
    h0 = h
    a = cast(a_hat)
    for i, w in enumerate(params["conv_ws"]):
        beta = math.log(lamda / (i + 1) + 1.0)
        agg = dot(a, cast(h))
        support = agg + alpha * (h0 - agg)
        sw = dot(cast(support), cast(w))
        h = jnp.maximum(support + beta * (sw - support), 0.0)
    return dot(cast(h), cast(params["w_out"].T)) + params["b_out"]


# ---------------------------------------------------------------------------
# Parameter / input construction
# ---------------------------------------------------------------------------

def init_gcnii_params(key, in_size, hidden_size, out_size, num_layers):
    """Deterministic init: uniform(-1/sqrt(fan_in), 1/sqrt(fan_in)) like nn.Linear."""
    params = {}
    k = key

    def uniform(k, shape, fan_in):
        bound = 1.0 / math.sqrt(fan_in)
        return jax.random.uniform(k, shape, jnp.float32, -bound, bound)

    k, k1, k2 = jax.random.split(k, 3)
    params["w_in"] = uniform(k1, (hidden_size, in_size), in_size)   # nn.Linear weight [out,in]
    params["b_in"] = uniform(k2, (1, hidden_size), in_size)

    conv_ws = []
    for _ in range(num_layers):
        k, kc = jax.random.split(k)
        conv_ws.append(uniform(kc, (hidden_size, hidden_size), hidden_size))
    params["conv_ws"] = conv_ws

    k, k1, k2 = jax.random.split(k, 3)
    params["w_out"] = uniform(k1, (out_size, hidden_size), hidden_size)
    params["b_out"] = uniform(k2, (1, out_size), hidden_size)
    return params


def build_normalized_adjacency(key, n_nodes):
    """Dense symmetric random graph with self-loops, D^-1/2 (A+I) D^-1/2."""
    a = jax.random.bernoulli(key, p=0.3, shape=(n_nodes, n_nodes)).astype(jnp.float32)
    a = jnp.maximum(a, a.T)                                          # symmetrize
    a = a.at[jnp.arange(n_nodes), jnp.arange(n_nodes)].set(1.0)      # self loops
    deg = jnp.sum(a, axis=1)
    d_inv_sqrt = 1.0 / jnp.sqrt(deg)
    return a * d_inv_sqrt[:, None] * d_inv_sqrt[None, :]


if __name__ == "__main__":
    # Small, module-consistent shapes
    N_NODES = 16
    IN_SIZE = 16
    HIDDEN = 32
    OUT_SIZE = 8
    NUM_LAYERS = 2
    ALPHA = 0.1
    LAMDA = 0.5

    key = jax.random.PRNGKey(0)
    k_graph, k_feat, k_params = jax.random.split(key, 3)

    a_hat = build_normalized_adjacency(k_graph, N_NODES)
    features = jax.random.normal(k_feat, (N_NODES, IN_SIZE), jnp.float32)
    params = init_gcnii_params(k_params, IN_SIZE, HIDDEN, OUT_SIZE, NUM_LAYERS)

    out = gcnii_forward(params, a_hat, features, alpha=ALPHA, lamda=LAMDA)
    out = jax.block_until_ready(out)

    assert out.shape == (N_NODES, OUT_SIZE), out.shape
    assert jnp.all(jnp.isfinite(out))

    # Tight check vs a reference that emulates the kernel's bf16 quantization.
    ref_q = gcnii_reference(params, a_hat, features, alpha=ALPHA, lamda=LAMDA,
                            emulate_bf16=True)
    err_q = float(jnp.max(jnp.abs(out - ref_q)))
    assert err_q < 2e-3, f"max abs error vs bf16-emulating reference: {err_q}"

    # Loose sanity check vs the pure-f32 reference (bf16 storage error only).
    ref_f32 = gcnii_reference(params, a_hat, features, alpha=ALPHA, lamda=LAMDA,
                              emulate_bf16=False)
    err_f = float(jnp.max(jnp.abs(out - ref_f32)))
    assert err_f < 1e-1, f"max abs error vs f32 reference: {err_f}"

    print("KERNEL_OK")
</pallas_src>

<mosaic_0001>
module attributes {stable_mosaic.version = 11 : i64} {
  func.func @_gcnii_fused_kernel(%arg0: i32, %arg1: memref<2xf32, #tpu.memory_space<smem>>, %arg2: memref<128x128xbf16, #tpu.memory_space<vmem>>, %arg3: memref<128x128xbf16, #tpu.memory_space<vmem>>, %arg4: memref<128x128xbf16, #tpu.memory_space<vmem>>, %arg5: memref<1x128xf32, #tpu.memory_space<vmem>>, %arg6: memref<1x128x128xbf16, #tpu.memory_space<vmem>>, %arg7: memref<128x128xbf16, #tpu.memory_space<vmem>>, %arg8: memref<1x128xf32, #tpu.memory_space<vmem>>, %arg9: memref<128x128xf32, #tpu.memory_space<vmem>>, %arg10: memref<128x128xf32, #tpu.memory_space<vmem>>, %arg11: memref<128x128xf32, #tpu.memory_space<vmem>>) attributes {dimension_semantics = [#tpu.dimension_semantics<arbitrary>], iteration_bounds = array<i64: 2>, scalar_prefetch = 0 : i64, scratch_operands = 2 : i64, tpu.core_type = #tpu.core_type<tc>, window_params = [{transform_indices = @transform_0, window_bounds = array<i64: 2>}, {pipeline_mode = #tpu.pipeline_mode<synchronous>, transform_indices = @transform_1, window_bounds = array<i64: 128, 128>}, {pipeline_mode = #tpu.pipeline_mode<synchronous>, transform_indices = @transform_2, window_bounds = array<i64: 128, 128>}, {pipeline_mode = #tpu.pipeline_mode<synchronous>, transform_indices = @transform_3, window_bounds = array<i64: 128, 128>}, {pipeline_mode = #tpu.pipeline_mode<synchronous>, transform_indices = @transform_4, window_bounds = array<i64: 1, 128>}, {transform_indices = @transform_5, window_bounds = array<i64: 1, 128, 128>}, {pipeline_mode = #tpu.pipeline_mode<synchronous>, transform_indices = @transform_6, window_bounds = array<i64: 128, 128>}, {pipeline_mode = #tpu.pipeline_mode<synchronous>, transform_indices = @transform_7, window_bounds = array<i64: 1, 128>}, {pipeline_mode = #tpu.pipeline_mode<synchronous>, transform_indices = @transform_8, window_bounds = array<i64: 128, 128>}]} {
    %c0_i32 = arith.constant 0 : i32
    %0 = arith.cmpi eq, %arg0, %c0_i32 : i32
    %1 = arith.extui %0 : i1 to i32
    %c0_i32_0 = arith.constant 0 : i32
    %2 = arith.cmpi ne, %1, %c0_i32_0 : i32
    scf.if %2 {
      %c0_15 = arith.constant 0 : index
      %c0_16 = arith.constant 0 : index
      %28 = vector.load %arg3[%c0_15, %c0_16] : memref<128x128xbf16, #tpu.memory_space<vmem>>, vector<128x128xbf16>
      %c0_17 = arith.constant 0 : index
      %c0_18 = arith.constant 0 : index
      %29 = vector.load %arg4[%c0_17, %c0_18] : memref<128x128xbf16, #tpu.memory_space<vmem>>, vector<128x128xbf16>
      %cst_19 = arith.constant dense<0.000000e+00> : vector<128x128xf32>
      %30 = tpu.matmul %28, %29, %cst_19 {dimension_numbers = #tpu.dot_dimension_numbers<[1], [0], [0], [1], [0, 0, 1, 1], [], []>} : vector<128x128xbf16>, vector<128x128xbf16>, vector<128x128xf32> -> vector<128x128xf32>
      %c0_20 = arith.constant 0 : index
      %c0_21 = arith.constant 0 : index
      %31 = vector.load %arg5[%c0_20, %c0_21] : memref<1x128xf32, #tpu.memory_space<vmem>>, vector<1x128xf32>
      %32 = vector.broadcast %31 : vector<1x128xf32> to vector<128x128xf32>
      %33 = arith.addf %30, %32 : vector<128x128xf32>
      %cst_22 = arith.constant 0.000000e+00 : f32
      %34 = vector.broadcast %cst_22 : f32 to vector<128x128xf32>
      %35 = arith.maximumf %33, %34 : vector<128x128xf32>
      %c0_23 = arith.constant 0 : index
      %c0_24 = arith.constant 0 : index
      %36 = vector.load %arg10[%c0_23, %c0_24] : memref<128x128xf32, #tpu.memory_space<vmem>>, vector<128x128xf32>
      tpu.vector_store %arg10[%c0_23, %c0_24], %35 {strides = array<i32>} : memref<128x128xf32, #tpu.memory_space<vmem>>, vector<128x128xf32>,
      %c0_25 = arith.constant 0 : index
      %c0_26 = arith.constant 0 : index
      %37 = vector.load %arg11[%c0_25, %c0_26] : memref<128x128xf32, #tpu.memory_space<vmem>>, vector<128x128xf32>
      tpu.vector_store %arg11[%c0_25, %c0_26], %35 {strides = array<i32>} : memref<128x128xf32, #tpu.memory_space<vmem>>, vector<128x128xf32>,
    } else {
    }
    %3 = arith.index_cast %arg0 : i32 to index
    %4 = memref.load %arg1[%3] : memref<2xf32, #tpu.memory_space<smem>>
    %c0 = arith.constant 0 : index
    %c0_1 = arith.constant 0 : index
    %5 = vector.load %arg10[%c0, %c0_1] : memref<128x128xf32, #tpu.memory_space<vmem>>, vector<128x128xf32>
    %6 = arith.truncf %5 : vector<128x128xf32> to vector<128x128xbf16>
    %c0_2 = arith.constant 0 : index
    %c0_3 = arith.constant 0 : index
    %7 = vector.load %arg2[%c0_2, %c0_3] : memref<128x128xbf16, #tpu.memory_space<vmem>>, vector<128x128xbf16>
    %cst = arith.constant dense<0.000000e+00> : vector<128x128xf32>
    %8 = tpu.matmul %7, %6, %cst {dimension_numbers = #tpu.dot_dimension_numbers<[1], [0], [0], [1], [0, 0, 1, 1], [], []>} : vector<128x128xbf16>, vector<128x128xbf16>, vector<128x128xf32> -> vector<128x128xf32>
    %c0_4 = arith.constant 0 : index
    %c0_5 = arith.constant 0 : index
    %9 = vector.load %arg11[%c0_4, %c0_5] : memref<128x128xf32, #tpu.memory_space<vmem>>, vector<128x128xf32>
    %10 = arith.subf %9, %8 : vector<128x128xf32>
    %cst_6 = arith.constant 1.000000e-01 : f32
    %11 = vector.broadcast %cst_6 : f32 to vector<128x128xf32>
    %12 = arith.mulf %11, %10 : vector<128x128xf32>
    %13 = arith.addf %8, %12 : vector<128x128xf32>
    %14 = arith.truncf %13 : vector<128x128xf32> to vector<128x128xbf16>
    %c0_7 = arith.constant 0 : index
    %c0_8 = arith.constant 0 : index
    %c0_9 = arith.constant 0 : index
    %15 = vector.load %arg6[%c0_7, %c0_8, %c0_9] : memref<1x128x128xbf16, #tpu.memory_space<vmem>>, vector<1x128x128xbf16>
    %16 = vector.shape_cast %15 : vector<1x128x128xbf16> to vector<128x128xbf16>
    %cst_10 = arith.constant dense<0.000000e+00> : vector<128x128xf32>
    %17 = tpu.matmul %14, %16, %cst_10 {dimension_numbers = #tpu.dot_dimension_numbers<[1], [0], [0], [1], [0, 0, 1, 1], [], []>} : vector<128x128xbf16>, vector<128x128xbf16>, vector<128x128xf32> -> vector<128x128xf32>
    %18 = arith.subf %17, %13 : vector<128x128xf32>
    %19 = vector.broadcast %4 : f32 to vector<128x128xf32>
    %20 = arith.mulf %19, %18 : vector<128x128xf32>
    %21 = arith.addf %13, %20 : vector<128x128xf32>
    %cst_11 = arith.constant 0.000000e+00 : f32
    %22 = vector.broadcast %cst_11 : f32 to vector<128x128xf32>
    %23 = arith.maximumf %21, %22 : vector<128x128xf32>
    %c0_12 = arith.constant 0 : index
    %c0_13 = arith.constant 0 : index
    %24 = vector.load %arg10[%c0_12, %c0_13] : memref<128x128xf32, #tpu.memory_space<vmem>>, vector<128x128xf32>
    tpu.vector_store %arg10[%c0_12, %c0_13], %23 {strides = array<i32>} : memref<128x128xf32, #tpu.memory_space<vmem>>, vector<128x128xf32>,
    %c1_i32 = arith.constant 1 : i32
    %25 = arith.cmpi eq, %arg0, %c1_i32 : i32
    %26 = arith.extui %25 : i1 to i32
    %c0_i32_14 = arith.constant 0 : i32
    %27 = arith.cmpi ne, %26, %c0_i32_14 : i32
    scf.if %27 {
      %28 = arith.truncf %23 : vector<128x128xf32> to vector<128x128xbf16>
      %c0_15 = arith.constant 0 : index
      %c0_16 = arith.constant 0 : index
      %29 = vector.load %arg7[%c0_15, %c0_16] : memref<128x128xbf16, #tpu.memory_space<vmem>>, vector<128x128xbf16>
      %cst_17 = arith.constant dense<0.000000e+00> : vector<128x128xf32>
      %30 = tpu.matmul %28, %29, %cst_17 {dimension_numbers = #tpu.dot_dimension_numbers<[1], [0], [0], [1], [0, 0, 1, 1], [], []>} : vector<128x128xbf16>, vector<128x128xbf16>, vector<128x128xf32> -> vector<128x128xf32>
      %c0_18 = arith.constant 0 : index
      %c0_19 = arith.constant 0 : index
      %31 = vector.load %arg8[%c0_18, %c0_19] : memref<1x128xf32, #tpu.memory_space<vmem>>, vector<1x128xf32>
      %32 = vector.broadcast %31 : vector<1x128xf32> to vector<128x128xf32>
      %33 = arith.addf %30, %32 : vector<128x128xf32>
      %c0_20 = arith.constant 0 : index
      %c0_21 = arith.constant 0 : index
      %34 = vector.load %arg9[%c0_20, %c0_21] : memref<128x128xf32, #tpu.memory_space<vmem>>, vector<128x128xf32>
      tpu.vector_store %arg9[%c0_20, %c0_21], %33 {strides = array<i32>} : memref<128x128xf32, #tpu.memory_space<vmem>>, vector<128x128xf32>,
    } else {
    }
    return
  }
  func.func @transform_0(%arg0: i32) -> i32 {
    %c0_i32 = arith.constant 0 : i32
    %c0_i32_0 = arith.constant 0 : i32
    return %c0_i32 : i32
  }
  func.func @transform_1(%arg0: i32) -> (i32, i32) {
    %c0_i32 = arith.constant 0 : i32
    %c0_i32_0 = arith.constant 0 : i32
    %c0_i32_1 = arith.constant 0 : i32
    return %c0_i32, %c0_i32_0 : i32, i32
  }
  func.func @transform_2(%arg0: i32) -> (i32, i32) {
    %c0_i32 = arith.constant 0 : i32
    %c0_i32_0 = arith.constant 0 : i32
    %c0_i32_1 = arith.constant 0 : i32
    return %c0_i32, %c0_i32_0 : i32, i32
  }
  func.func @transform_3(%arg0: i32) -> (i32, i32) {
    %c0_i32 = arith.constant 0 : i32
    %c0_i32_0 = arith.constant 0 : i32
    %c0_i32_1 = arith.constant 0 : i32
    return %c0_i32, %c0_i32_0 : i32, i32
  }
  func.func @transform_4(%arg0: i32) -> (i32, i32) {
    %c0_i32 = arith.constant 0 : i32
    %c0_i32_0 = arith.constant 0 : i32
    %c0_i32_1 = arith.constant 0 : i32
    return %c0_i32, %c0_i32_0 : i32, i32
  }
  func.func @transform_5(%arg0: i32) -> (i32, i32, i32) {
    %c0_i32 = arith.constant 0 : i32
    %c0_i32_0 = arith.constant 0 : i32
    %c0_i32_1 = arith.constant 0 : i32
    return %arg0, %c0_i32, %c0_i32_0 : i32, i32, i32
  }
  func.func @transform_6(%arg0: i32) -> (i32, i32) {
    %c0_i32 = arith.constant 0 : i32
    %c0_i32_0 = arith.constant 0 : i32
    %c0_i32_1 = arith.constant 0 : i32
    return %c0_i32, %c0_i32_0 : i32, i32
  }
  func.func @transform_7(%arg0: i32) -> (i32, i32) {
    %c0_i32 = arith.constant 0 : i32
    %c0_i32_0 = arith.constant 0 : i32
    %c0_i32_1 = arith.constant 0 : i32
    return %c0_i32, %c0_i32_0 : i32, i32
  }
  func.func @transform_8(%arg0: i32) -> (i32, i32) {
    %c0_i32 = arith.constant 0 : i32
    %c0_i32_0 = arith.constant 0 : i32
    %c0_i32_1 = arith.constant 0 : i32
    return %c0_i32, %c0_i32_0 : i32, i32
  }
}

</mosaic_0001>

<bundles_post_ra>
// kernel: tpu_custom_call.1
= control target key start
LH: loop header
LB: loop body
LE: loop exit
PB: predicated region body
PF: predicated region fallthrough
CT: control target
= control target key end

     0   :  { %13 = vsyncpa [#allocation7], 0  ;;  %s2672_s0 = inlined_call_operand.hbm [shape: f32[2], index: 0, kind: input, shape index: {}]   ;;  %s2673_s1 = inlined_call_operand.hbm [shape: bf16[128,128], index: 1, kind: input, shape index: {}]   ;;  %s2674_s2 = inlined_call_operand.hbm [shape: bf16[128,128], index: 2, kind: input, shape index: {}]   ;;  %s2675_s3 = inlined_call_operand.hbm [shape: bf16[128,128], index: 3, kind: input, shape index: {}]   ;;  %s2676_s4 = inlined_call_operand.vmem [shape: f32[1,128], index: 4, kind: input, shape index: {}]   ;;  %s2677_s5 = inlined_call_operand.hbm [shape: bf16[2,128,128], index: 5, kind: input, shape index: {}]   ;;  %s2678_s6 = inlined_call_operand.hbm [shape: bf16[128,128], index: 6, kind: input, shape index: {}]   ;;  %s2679_s7 = inlined_call_operand.vmem [shape: f32[1,128], index: 7, kind: input, shape index: {}]   ;;  %s2680_s8 = inlined_call_operand.hbm [shape: f32[128,128], index: 8, kind: output, shape index: {}]  }
   0x1   :  { %14 = vsyncpa [#allocation5], 0 }
   0x2   :  { %15 = vsyncpa [#allocation10], 0 }
   0x3   :  { %16 = vsyncpa [#allocation13], 0 }
   0x4   :  { %18 = vsyncpa [#allocation13 + $0x1], 0 }
   0x5   :  { %19 = vsyncpa [#allocation6], 0  ;;  %s2199_s27 = smov 0   ;;  %s2201_s28 = smov 0  }
   0x6   :  { %s2203_s29 = smov 0   ;;  %s2205_s30 = smov 0  }
   0x7 LB: > { %s2218_s9 = sadd.s32 4294967295, %s2141_s30   ;;  %p150_p0 = scmp.ne.s32.totalorder %s2133_s28, %s2129_s27  ;;  %s2141_s30 = sphi %s2205_s30, %s2706_s30   ;;  %s2137_s29 = sphi %s2203_s29, %s2705_s29   ;;  %s2133_s28 = sphi %s2201_s28, %s2704_s28   ;;  %s2129_s27 = sphi %s2199_s27, %s2703_s27  }
   0x8   : > { %p2681_p1 = scmp.eq.s32.totalorder %s2218_s9, 0  ;;  %p1475_p2 = scmp.ge.s32.totalorder %s2141_s30, 1 }
   0x9   : > { %p224_p3 = scmp.lt.s32.totalorder %s2141_s30, 3  ;;  %s2143_s12 = smov [#allocation9]  }
   0xa   : > { %p2227_p5 = por %p2681_p1, %p150_p0  ;;  %s258_s13 = sshll.u32 %s2143_s12, 4  ;;  %s259_s13 = int_to_ptr.vmem [resolvable:$true] %s258_s13 }
   0xb   : > { %p2231_p6 = pnand %p1475_p2, %p224_p3  ;;  %s2144_s15 = smov [#allocation14]  }
   0xc   : > { %s2686_s10 = scalar_select %p2227_p5, 1, 0 }
   0xd   : > { %s2687_s11 = scalar_select %p2231_p6, 1, 0 }
   0xe   : > { %p1791_p7 = pneg %p2231_p6  ;;  %s287_s16 = sshll.u32 %s2144_s15, 4  ;;  %s2243_s16 = int_to_ptr.vmem [resolvable:$true] %s287_s16 }
   0xf   : > { %s1906_s19 = scalar_lea.hbm %s2674_s2, 1024 }
  0x10   : > { %p2239_p8 = pnand %p1791_p7, %p2681_p1  ;;  %p1907_p9 = scmp.ne.s32.totalorder %s2674_s2, %s1906_s19 }
  0x11   : > { %p1913_p13 = scmp.lt.u32.totalorder %s1906_s19, %s2674_s2 }
  0x12   : > { %p2253_p10 = pneg %p2239_p8 }
  0x14   : > { %p1909_p11 = pnand %p2253_p10, %p1907_p9 }
  0x16   : > { %p1910_p12 = pneg %p1909_p11 }
  0x18   : > { %p1915_p0 = pnand %p1913_p13, %p1910_p12 }
  0x1a   : > { %1918 = shalt.err (!%p1915_p0)
}
  0x1b   : > { %s1919_s25 = scalar_lea.vmem %s259_s13, 1024  ;;  %p1927_p4 = scmp.lt.s32.totalorder %s259_s13, %s259_s13 }
  0x1c   : > { %p1920_p2 = scmp.ne.s32.totalorder %s259_s13, %s1919_s25  ;;  %p1928_p1 = scmp.lt.s32.totalorder %s1919_s25, %s1919_s25 }
  0x1e   : > { %p1922_p3 = pnand %p1920_p2, %p2253_p10  ;;  %p1929_p5 = por %p1928_p1, %p1927_p4 }
  0x20   : > { %p1923_p7 = pneg %p1922_p3 }
  0x22   : > { %p1930_p6 = pnand %p1929_p5, %p1923_p7 }
  0x24   : > { %1933 = shalt.err (!%p1930_p6)
}
  0x25   : > { %s2684_s26 = smov 64   ;;  %s2146_s27 = smov 4  }
  0x26   : > { %1800 = dma.hbm_to_vmem [thread:$0]  (!%p2239_p8), %s2674_s2, 1024, %s259_s13, [#allocation10], %s2684_s26, %s2684_s26, %s2146_s27  }
  0x27   : > { %s1934_s19 = scalar_lea.hbm %s2678_s6, 1024 }
  0x28   : > { %p1935_p1 = scmp.ne.s32.totalorder %s2678_s6, %s1934_s19  ;;  %p1941_p6 = scmp.lt.u32.totalorder %s1934_s19, %s2678_s6 }
  0x2a   : > { %p1937_p4 = pnand %p1935_p1, %p2253_p10 }
  0x2c   : > { %p1938_p5 = pneg %p1937_p4 }
  0x2e   : > { %p1943_p9 = pnand %p1941_p6, %p1938_p5 }
  0x30   : > { %1946 = shalt.err (!%p1943_p9)
}
  0x31   : > { %s1947_s13 = scalar_lea.vmem %s2243_s16, 1024  ;;  %p1955_p0 = scmp.lt.s32.totalorder %s2243_s16, %s2243_s16 }
  0x32   : > { %p1948_p11 = scmp.ne.s32.totalorder %s2243_s16, %s1947_s13  ;;  %p1956_p2 = scmp.lt.s32.totalorder %s1947_s13, %s1947_s13 }
  0x34   : > { %p1950_p12 = pnand %p1948_p11, %p2253_p10  ;;  %p1957_p3 = por %p1956_p2, %p1955_p0 }
  0x36   : > { %p1951_p13 = pneg %p1950_p12 }
  0x38   : > { %p1958_p7 = pnand %p1957_p3, %p1951_p13 }
  0x3a   : > { %1961 = shalt.err (!%p1958_p7)
}
  0x3b   : > { %1806 = dma.hbm_to_vmem [thread:$0]  (!%p2239_p8), %s2678_s6, 1024, %s2243_s16, [#allocation13], %s2684_s26, %s2684_s26, %s2146_s27  }
  0x3c   : > { %s1962_s18 = scalar_lea.hbm %s2672_s0, 16 }
  0x3d   : > { %p1963_p1 = scmp.ne.s32.totalorder %s2672_s0, %s1962_s18  ;;  %p1969_p6 = scmp.lt.u32.totalorder %s1962_s18, %s2672_s0 }
  0x3f   : > { %p1965_p4 = pnand %p1963_p1, %p2253_p10 }
  0x41   : > { %p1966_p5 = pneg %p1965_p4 }
  0x43   : > { %p1971_p9 = pnand %p1969_p6, %p1966_p5 }
  0x45   : > { %1974 = shalt.err (!%p1971_p9)
}
  0x46   : > { %s2147_s24 = smov [#allocation4]   ;;  %s2148_s25 = smov [#allocation8]  }
  0x47   : > { %1794 = dma.hbm_to_smem (!%p2239_p8), %s2672_s0, 16, %s2147_s24, [#allocation7]  }
  0x48   : > { %s245_s12 = sshll.u32 %s2148_s25, 4  ;;  %s2149_s15 = smov [#allocation11]   ;;  %s246_s12 = int_to_ptr.vmem [resolvable:$true] %s245_s12 }
  0x49   : > { %s271_s17 = sshll.u32 %s2149_s15, 4  ;;  %s1975_s21 = scalar_lea.hbm %s2673_s1, 1024  ;;  %s272_s17 = int_to_ptr.vmem [resolvable:$true] %s271_s17 }
  0x4a   : > { %p1976_p11 = scmp.ne.s32.totalorder %s2673_s1, %s1975_s21  ;;  %p1982_p0 = scmp.lt.u32.totalorder %s1975_s21, %s2673_s1 }
  0x4c   : > { %p1978_p12 = pnand %p1976_p11, %p2253_p10 }
  0x4e   : > { %p1979_p13 = pneg %p1978_p12 }
  0x50   : > { %p1984_p2 = pnand %p1982_p0, %p1979_p13 }
  0x52   : > { %1987 = shalt.err (!%p1984_p2)
}
  0x53   : > { %s1988_s24 = scalar_lea.vmem %s246_s12, 1024  ;;  %p1996_p4 = scmp.lt.s32.totalorder %s246_s12, %s246_s12 }
  0x54   : > { %p1989_p3 = scmp.ne.s32.totalorder %s246_s12, %s1988_s24  ;;  %p1997_p5 = scmp.lt.s32.totalorder %s1988_s24, %s1988_s24 }
  0x56   : > { %p1991_p7 = pnand %p1989_p3, %p2253_p10  ;;  %p1998_p6 = por %p1997_p5, %p1996_p4 }
  0x58   : > { %p1992_p1 = pneg %p1991_p7 }
  0x5a   : > { %p1999_p9 = pnand %p1998_p6, %p1992_p1 }
  0x5c   : > { %2002 = shalt.err (!%p1999_p9)
}
  0x5d   : > { %s2690_s13 = smov 64   ;;  %s2003_s20 = scalar_lea.hbm %s2675_s3, 1024 }
  0x5e   : > { %1797 = dma.hbm_to_vmem [thread:$0]  (!%p2239_p8), %s2673_s1, 1024, %s246_s12, [#allocation5], %s2690_s13, %s2690_s13, %s2146_s27  }
  0x5f   : > { %p2004_p11 = scmp.ne.s32.totalorder %s2675_s3, %s2003_s20  ;;  %p2010_p0 = scmp.lt.u32.totalorder %s2003_s20, %s2675_s3 }
  0x61   : > { %p2006_p12 = pnand %p2004_p11, %p2253_p10 }
  0x63   : > { %p2007_p13 = pneg %p2006_p12 }
  0x65   : > { %p2012_p2 = pnand %p2010_p0, %p2007_p13 }
  0x67   : > { %2015 = shalt.err (!%p2012_p2)
}
  0x68   : > { %s2016_s24 = scalar_lea.vmem %s272_s17, 1024  ;;  %p2024_p4 = scmp.lt.s32.totalorder %s272_s17, %s272_s17 }
  0x69   : > { %p2017_p3 = scmp.ne.s32.totalorder %s272_s17, %s2016_s24  ;;  %p2025_p5 = scmp.lt.s32.totalorder %s2016_s24, %s2016_s24 }
  0x6b   : > { %p2019_p7 = pnand %p2017_p3, %p2253_p10  ;;  %p2026_p6 = por %p2025_p5, %p2024_p4 }
  0x6d   : > { %p2020_p1 = pneg %p2019_p7 }
  0x6f   : > { %p2027_p9 = pnand %p2026_p6, %p2020_p1 }
  0x71   : > { %2030 = shalt.err (!%p2027_p9)
}
  0x72   : > { %1803 = dma.hbm_to_vmem [thread:$0]  (!%p2239_p8), %s2675_s3, 1024, %s272_s17, [#allocation10], %s2690_s13, %s2690_s13, %s2146_s27  }
  0x73   : > { %s2357_s22 = sadd.s32 1, %s2141_s30   ;;  %s137_s25 = sadd.s32 1, %s2137_s29 }
  0x74   : > { %s134_s14 = ssub.s32 %s2141_s30, %s2357_s22  ;;  %p144_p11 = scmp.ne.s32.totalorder %s2137_s29, %s2133_s28 }
  0x75   : > { %p135_p10 = scmp.eq.s32.totalorder %s134_s14, 0  ;;  %p145_p12 = scmp.eq.s32.totalorder %s2141_s30, 0 }
  0x76   : > { %p1816_p13 = scmp.lt.s32.totalorder %s2141_s30, 2  ;;  %s304_s19 = sand.u32 1, %s2141_s30  }
  0x77   : > { %s2367_s15 = scalar_select %p135_p10, %s2137_s29, %s137_s25  }
  0x78   : > { %p146_p0 = por %p145_p12, %p144_p11  ;;  %s306_s20 = sand.u32 1, %s2137_s29  }
  0x79   : > { %s1482_s21 = sshll.u32 %s306_s20, 6  ;;  %s1540_s18 = sshll.u32 %s2141_s30, 10 }
  0x7a   : > { %s2375_s17 = scalar_lea.hbm %s2677_s5, %s1540_s18  ;;  %s308_s24 = scalar_lea.vmem [#allocation12], %s1482_s21 }
  0x7b   : > { %s315_s12 = sshll.u32 %s308_s24, 4  ;;  %p2377_p8 = pnand %p1816_p13, %p146_p0  ;;  %s2381_s12 = int_to_ptr.vmem [resolvable:$true] %s315_s12 }
  0x7c   : > { %s2383_s30 = scalar_lea.sflag [#allocation13], %s304_s19  ;;  %s2031_s14 = scalar_lea.hbm %s2375_s17, 1024 }
  0x7d   : > { %p2032_p2 = scmp.ne.s32.totalorder %s2375_s17, %s2031_s14  ;;  %p2033_p3 = pneg %p2377_p8 }
  0x7e   : > { %s2036_s21 = scalar_lea.hbm %s2677_s5, 2048  ;;  %p2037_p4 = scmp.lt.u32.totalorder %s2375_s17, %s2677_s5 }
  0x7f   : > { %p2034_p7 = pnand %p2033_p3, %p2032_p2  ;;  %p2038_p5 = scmp.lt.u32.totalorder %s2036_s21, %s2031_s14 }
  0x80   : > { %p2040_p9 = scmp.lt.u32.totalorder %s2031_s14, %s2375_s17 }
  0x81   : > { %p2035_p1 = pneg %p2034_p7  ;;  %p2039_p6 = por %p2038_p5, %p2037_p4 }
  0x83   : > { %p2041_p10 = por %p2040_p9, %p2039_p6 }
  0x85   : > { %p2042_p11 = pnand %p2041_p10, %p2035_p1 }
  0x87   : > { %2045 = shalt.err (!%p2042_p11)
}
  0x88   : > { %s2046_s19 = scalar_lea.vmem %s2381_s12, 1024  ;;  %s2150_s16 = smov [#allocation12]  }
  0x89   : > { %p2047_p12 = scmp.ne.s32.totalorder %s2381_s12, %s2046_s19  ;;  %s2051_s24 = sshll.u32 %s2150_s16, 4  ;;  %s2052_s24 = int_to_ptr.vmem [resolvable:$false] %s2051_s24 }
  0x8a   : > { %s2053_s25 = scalar_lea.vmem %s2052_s24, 2048  ;;  %p2054_p2 = scmp.lt.s32.totalorder %s2381_s12, %s2052_s24 }
  0x8b   : > { %p2049_p13 = pnand %p2047_p12, %p2033_p3  ;;  %p2055_p7 = scmp.lt.s32.totalorder %s2053_s25, %s2046_s19 }
  0x8d   : > { %p2050_p0 = pneg %p2049_p13  ;;  %p2056_p4 = por %p2055_p7, %p2054_p2 }
  0x8f   : > { %p2057_p5 = pnand %p2056_p4, %p2050_p0 }
  0x91   : > { %2060 = shalt.err (!%p2057_p5)
}
  0x92   : > { %1810 = dma.hbm_to_vmem [thread:$0]  (!%p2377_p8), %s2375_s17, 1024, %s2381_s12, %s2383_s30, %s2690_s13, %s2690_s13, %s2146_s27  }
  0x93   : > { %p2692_p3 = scmp.ne.s32.totalorder %s2687_s11, 0 }
  0x94   : > { %p2693_p1 = scmp.eq.s32.totalorder (!%p2692_p3), %s2218_s9, 0 }
  0x95   : > { %327 = sbr.rel (%p2692_p3) target bundleno = 1224 (0x4c8), region = 52 }
  0x9c   : > { %2104 = dma.done.wait (%p2693_p1), [#allocation7], 16   ;;  %p2694_p6 = pmov %p2693_p1 }
  0x9d   : > { %p2695_p9 = pmov %p2693_p1 }
  0x9e   : > { %2106 = vsyncadd (%p2694_p6), [#allocation7], 4294967280 }
  0x9f   : > { %2108 = dma.done.wait (%p2695_p9), [#allocation5], 1024   ;;  %p2696_p10 = pmov %p2693_p1 }
  0xa0   : > { %p2697_p11 = pmov %p2693_p1 }
  0xa1   : > { %2110 = vsyncadd (%p2696_p10), [#allocation5], 4294966272 }
  0xa2   : > { %2112 = dma.done.wait (%p2697_p11), [#allocation10], 2048   ;;  %p2698_p8 = pmov %p2693_p1 }
  0xa3   : > { %s345_s11 = sand.u32 1, %s2218_s9   ;;  %s347_s27 = sand.u32 1, %s2133_s28  }
  0xa4   : > { %2114 = vsyncadd (%p2698_p8), [#allocation10], 4294965248  ;;  %s1490_s13 = sshll.u32 %s347_s27, 6  ;;  %s346_s17 = scalar_lea.sflag [#allocation13], %s345_s11 }
  0xa5   : > { %s2430_s12 = scalar_lea.vmem [#allocation12], %s1490_s13  ;;  %p2699_p12 = scmp.ne.s32.totalorder %s2686_s10, 0 }
  0xa7   : > { %2116 = dma.done.wait (%p2699_p12), %s346_s17, 1024  }
  0xa8   : > { %2118 = vsyncadd (%p2699_p12), %s346_s17, 4294966272  ;;  %p2700_p13 = pmov %p2693_p1 }
  0xa9   : > { %p2701_p0 = pmov %p2693_p1 }
  0xaa   : > { %2120 = dma.done.wait (%p2700_p13), [#allocation13], 1024  }
  0xab   : > { %2122 = vsyncadd (%p2701_p0), [#allocation13], 4294966272 }
  0xac   : > { %358 = sfence }
  0xad   : > { %p2702_p2 = scmp.ne.s32.totalorder %s2218_s9, 0 }
  0xae   : > { %v1866_v0 = vld [vmem:[#allocation11] sm:$0xff] (!%p2702_p2)   ;;  %v1867_v1 = vld [vmem:[#allocation11 + $0x8] sm:$0xff] (!%p2702_p2)   ;;  %v1868_v2 = vld [vmem:[#allocation11 + $0x10] sm:$0xff] (!%p2702_p2)  }
  0xaf   : > { %386 = sbr.rel (%p2702_p2) target bundleno = 439 (0x1b7), region = 80  ;;  %1605 = vmatprep.subr.bf16.mxu0 (!%p2702_p2), %v1866_v0  ;;  %1733 = vmatprep.subr.bf16.mxu1 (!%p2702_p2), %v1866_v0  ;;  %v1869_v3 = vld [vmem:[#allocation11 + $0x18] sm:$0xff] (!%p2702_p2)   ;;  %v1874_v4 = vld [vmem:[#allocation9] sm:$0xff] (!%p2702_p2)   ;;  %v1871_v7 = vld [vmem:[#allocation11 + $0x28] sm:$0xff] (!%p2702_p2)  }
  0xb0   : > { %1606 = vmatpush3.bf16.msra.mxu0 (!%p2702_p2), %v1866_v0  ;;  %1741 = vmatpush3.bf16.msra.mxu1 (!%p2702_p2), %v1866_v0  ;;  %v1875_v5 = vld [vmem:[#allocation9 + $0x20] sm:$0xff] (!%p2702_p2)   ;;  %v1872_v8 = vld [vmem:[#allocation11 + $0x30] sm:$0xff] (!%p2702_p2)   ;;  %v1873_v9 = vld [vmem:[#allocation11 + $0x38] sm:$0xff] (!%p2702_p2)  }
  0xb1   : > { %1607 = vmatprep.subr.bf16.mxu0 (!%p2702_p2), %v1867_v1  ;;  %1734 = vmatprep.subr.bf16.mxu1 (!%p2702_p2), %v1867_v1  ;;  %v1870_v6 = vld [vmem:[#allocation11 + $0x20] sm:$0xff] (!%p2702_p2)   ;;  %v1876_v10 = vld [vmem:[#allocation9 + $0x8] sm:$0xff] (!%p2702_p2)   ;;  %v1878_v12 = vld [vmem:[#allocation9 + $0x10] sm:$0xff] (!%p2702_p2)  }
  0xb2   : > { %1621 = vmatprep.mubr.bf16.mxu0 (!%p2702_p2), %v1874_v4  ;;  %1629 = vmatprep.mubr.bf16.mxu1 (!%p2702_p2), %v1875_v5  ;;  %v1877_v11 = vld [vmem:[#allocation9 + $0x28] sm:$0xff] (!%p2702_p2)   ;;  %v1879_v13 = vld [vmem:[#allocation9 + $0x30] sm:$0xff] (!%p2702_p2)   ;;  %v1880_v14 = vld [vmem:[#allocation9 + $0x18] sm:$0xff] (!%p2702_p2)  }
  0xb3   : > { %v1881_v15 = vld [vmem:[#allocation9 + $0x38] sm:$0xff] (!%p2702_p2)   ;;  %v1493_v16 = vld [vmem:[%s2676_s4] ss:$0 sm:$0xff] (!%p2702_p2) }
  0xb4   : > { %1608 = vmatpush3.bf16.msra.mxu0 (!%p2702_p2), %v1867_v1  ;;  %1742 = vmatpush3.bf16.msra.mxu1 (!%p2702_p2), %v1867_v1 }
  0xb5   : > { %1609 = vmatprep.subr.bf16.mxu0 (!%p2702_p2), %v1868_v2  ;;  %1735 = vmatprep.subr.bf16.mxu1 (!%p2702_p2), %v1868_v2 }
  0xb8   : > { %1610 = vmatpush3.bf16.msra.mxu0 %v1868_v2  ;;  %1743 = vmatpush3.bf16.msra.mxu1 %v1868_v2 }
  0xb9   : > { %1611 = vmatprep.subr.bf16.mxu0 %v1869_v3  ;;  %1736 = vmatprep.subr.bf16.mxu1 %v1869_v3 }
  0xbc   : > { %1612 = vmatpush3.bf16.msra.mxu0 %v1869_v3  ;;  %1744 = vmatpush3.bf16.msra.mxu1 %v1869_v3 }
  0xbd   : > { %1613 = vmatprep.subr.bf16.mxu0 %v1870_v6  ;;  %1737 = vmatprep.subr.bf16.mxu1 %v1870_v6 }
  0xc0   : > { %1614 = vmatpush3.bf16.msra.mxu0 %v1870_v6  ;;  %1745 = vmatpush3.bf16.msra.mxu1 %v1870_v6 }
  0xc1   : > { %1615 = vmatprep.subr.bf16.mxu0 %v1871_v7  ;;  %1738 = vmatprep.subr.bf16.mxu1 %v1871_v7 }
  0xc4   : > { %1616 = vmatpush3.bf16.msra.mxu0 %v1871_v7  ;;  %1746 = vmatpush3.bf16.msra.mxu1 %v1871_v7 }
  0xc5   : > { %1617 = vmatprep.subr.bf16.mxu0 %v1872_v8  ;;  %1739 = vmatprep.subr.bf16.mxu1 %v1872_v8 }
  0xc8   : > { %1618 = vmatpush3.bf16.msra.mxu0 %v1872_v8  ;;  %1747 = vmatpush3.bf16.msra.mxu1 %v1872_v8 }
  0xc9   : > { %1619 = vmatprep.subr.bf16.mxu0 %v1873_v9  ;;  %1740 = vmatprep.subr.bf16.mxu1 %v1873_v9 }
  0xcc   : > { %1620 = vmatpush3.bf16.msra.mxu0 %v1873_v9  ;;  %1748 = vmatpush3.bf16.msra.mxu1 %v1873_v9 }
  0xcf   : > { %1622 = vmatmul.mubr.bf16.vlgmr.msra.gmra.mrb[0].mxu0 %v1876_v10  ;;  %1630 = vmatmul.mubr.bf16.vlgmr.msra.gmra.mrb[0].mxu1 %v1877_v11 }
  0xd0   : > { %1625 = vmatprep.mubr.bf16.mxu0 %v1878_v12  ;;  %1633 = vmatprep.mubr.bf16.mxu1 %v1879_v13 }
  0xd7   : > { %1626 = vmatmul.mubr.bf16.gmra.mrb[4].mxu0 %v1880_v14  ;;  %1634 = vmatmul.mubr.bf16.gmra.mrb[4].mxu1 %v1881_v15 }
 0x1a2   : > { %v1623_v17 = vpop.f32.mrb[0].mxu0  ;;  %v1631_v18 = vpop.f32.mrb[0].mxu1 }
 0x1a3   : > { %v565_v19 = vadd.f32 %v1623_v17, %v1493_v16  ;;  %v597_v20 = vadd.f32 %v1631_v18, %v1493_v16  ;;  %v556_v21 = vpop.f32.mrb[1].mxu0  ;;  %v588_v22 = vpop.f32.mrb[1].mxu1 }
 0x1a4   : > { %v557_v23 = vadd.f32 %v1493_v16, %v556_v21  ;;  %v589_v24 = vadd.f32 %v1493_v16, %v588_v22  ;;  %v1624_v25 = vpop.f32.mrb[2].mxu0  ;;  %v1632_v26 = vpop.f32.mrb[2].mxu1 }
 0x1a5   : > { %v621_v27 = vmax.f32 %v565_v19, 0.0  ;;  %v629_v28 = vmax.f32 %v597_v20, 0.0  ;;  %v568_v29 = vadd.f32 %v1624_v25, %v1493_v16  ;;  %v600_v30 = vadd.f32 %v1632_v26, %v1493_v16  ;;  %v559_v31 = vpop.f32.mrb[3].mxu0  ;;  %v591_v32 = vpop.f32.mrb[3].mxu1 }
 0x1a6   : > { %v619_v33 = vmax.f32 %v557_v23, 0.0  ;;  %v627_v34 = vmax.f32 %v589_v24, 0.0  ;;  %v560_v35 = vadd.f32 %v1493_v16, %v559_v31  ;;  %v592_v36 = vadd.f32 %v1493_v16, %v591_v32 }
 0x1a7   : > { %637 = vst [vmem:[#allocation2 + $0x10] sm:$0xff] %v621_v27  ;;  %653 = vst [vmem:[#allocation3 + $0x10] sm:$0xff] %v621_v27  ;;  %v622_v37 = vmax.f32 %v568_v29, 0.0  ;;  %v630_v38 = vmax.f32 %v600_v30, 0.0 }
 0x1a8   : > { %645 = vst [vmem:[#allocation2 + $0x50] sm:$0xff] %v629_v28  ;;  %661 = vst [vmem:[#allocation3 + $0x50] sm:$0xff] %v629_v28  ;;  %v620_v39 = vmax.f32 %v560_v35, 0.0  ;;  %v628_v40 = vmax.f32 %v592_v36, 0.0 }
 0x1a9   : > { %635 = vst [vmem:[#allocation2] sm:$0xff] %v619_v33  ;;  %651 = vst [vmem:[#allocation3] sm:$0xff] %v619_v33 }
 0x1aa   : > { %643 = vst [vmem:[#allocation2 + $0x40] sm:$0xff] %v627_v34  ;;  %659 = vst [vmem:[#allocation3 + $0x40] sm:$0xff] %v627_v34  ;;  %v1627_v41 = vpop.f32.mrb[4].mxu0  ;;  %v1635_v42 = vpop.f32.mrb[4].mxu1 }
 0x1ab   : > { %638 = vst [vmem:[#allocation2 + $0x18] sm:$0xff] %v622_v37  ;;  %654 = vst [vmem:[#allocation3 + $0x18] sm:$0xff] %v622_v37  ;;  %v581_v43 = vadd.f32 %v1627_v41, %v1493_v16  ;;  %v613_v44 = vadd.f32 %v1635_v42, %v1493_v16  ;;  %v572_v45 = vpop.f32.mrb[5].mxu0  ;;  %v604_v46 = vpop.f32.mrb[5].mxu1 }
 0x1ac   : > { %646 = vst [vmem:[#allocation2 + $0x58] sm:$0xff] %v630_v38  ;;  %662 = vst [vmem:[#allocation3 + $0x58] sm:$0xff] %v630_v38  ;;  %v573_v47 = vadd.f32 %v1493_v16, %v572_v45  ;;  %v605_v48 = vadd.f32 %v1493_v16, %v604_v46  ;;  %v1628_v49 = vpop.f32.mrb[6].mxu0  ;;  %v1636_v50 = vpop.f32.mrb[6].mxu1 }
 0x1ad   : > { %636 = vst [vmem:[#allocation2 + $0x8] sm:$0xff] %v620_v39  ;;  %652 = vst [vmem:[#allocation3 + $0x8] sm:$0xff] %v620_v39  ;;  %v625_v51 = vmax.f32 %v581_v43, 0.0  ;;  %v633_v52 = vmax.f32 %v613_v44, 0.0  ;;  %v584_v53 = vadd.f32 %v1628_v49, %v1493_v16  ;;  %v616_v54 = vadd.f32 %v1636_v50, %v1493_v16  ;;  %v575_v55 = vpop.f32.mrb[7].mxu0  ;;  %v607_v56 = vpop.f32.mrb[7].mxu1 }
 0x1ae   : > { %644 = vst [vmem:[#allocation2 + $0x48] sm:$0xff] %v628_v40  ;;  %660 = vst [vmem:[#allocation3 + $0x48] sm:$0xff] %v628_v40  ;;  %v623_v57 = vmax.f32 %v573_v47, 0.0  ;;  %v631_v58 = vmax.f32 %v605_v48, 0.0  ;;  %v576_v59 = vadd.f32 %v1493_v16, %v575_v55  ;;  %v608_v60 = vadd.f32 %v1493_v16, %v607_v56 }
 0x1af   : > { %641 = vst [vmem:[#allocation2 + $0x30] sm:$0xff] %v625_v51  ;;  %657 = vst [vmem:[#allocation3 + $0x30] sm:$0xff] %v625_v51  ;;  %v626_v61 = vmax.f32 %v584_v53, 0.0  ;;  %v634_v62 = vmax.f32 %v616_v54, 0.0 }
 0x1b0   : > { %649 = vst [vmem:[#allocation2 + $0x70] sm:$0xff] %v633_v52  ;;  %665 = vst [vmem:[#allocation3 + $0x70] sm:$0xff] %v633_v52  ;;  %v624_v63 = vmax.f32 %v576_v59, 0.0  ;;  %v632_v0 = vmax.f32 %v608_v60, 0.0 }
 0x1b1   : > { %639 = vst [vmem:[#allocation2 + $0x20] sm:$0xff] %v623_v57  ;;  %655 = vst [vmem:[#allocation3 + $0x20] sm:$0xff] %v623_v57 }
 0x1b2   : > { %647 = vst [vmem:[#allocation2 + $0x60] sm:$0xff] %v631_v58  ;;  %663 = vst [vmem:[#allocation3 + $0x60] sm:$0xff] %v631_v58 }
 0x1b3   : > { %642 = vst [vmem:[#allocation2 + $0x38] sm:$0xff] %v626_v61  ;;  %658 = vst [vmem:[#allocation3 + $0x38] sm:$0xff] %v626_v61 }
 0x1b4   : > { %650 = vst [vmem:[#allocation2 + $0x78] sm:$0xff] %v634_v62  ;;  %666 = vst [vmem:[#allocation3 + $0x78] sm:$0xff] %v634_v62 }
 0x1b5   : > { %640 = vst [vmem:[#allocation2 + $0x28] sm:$0xff] %v624_v63  ;;  %656 = vst [vmem:[#allocation3 + $0x28] sm:$0xff] %v624_v63 }
 0x1b6   : > { %648 = vst [vmem:[#allocation2 + $0x68] sm:$0xff] %v632_v0  ;;  %664 = vst [vmem:[#allocation3 + $0x68] sm:$0xff] %v632_v0 }
 0x1b7 PF: > { %v668_v1 = vld [vmem:[#allocation2] sm:$0xff]  ;;  %v669_v2 = vld [vmem:[#allocation2 + $0x8] sm:$0xff]  ;;  %v670_v3 = vld [vmem:[#allocation2 + $0x10] sm:$0xff]  ;;  %s667_s30 = sld [smem:[#allocation4 + %s2218_s9]]  ;;  %p1526_p7 = scmp.ne.s32.totalorder %s2218_s9, 1 }
 0x1b8   : > { %v684_v4 = vpack.c.bf16 %v669_v2, %v668_v1  ;;  %v671_v5 = vld [vmem:[#allocation2 + $0x18] sm:$0xff]  ;;  %v672_v7 = vld [vmem:[#allocation2 + $0x20] sm:$0xff]  ;;  %v674_v9 = vld [vmem:[#allocation2 + $0x30] sm:$0xff] }
 0x1b9   : > { %v685_v6 = vpack.c.bf16 %v671_v5, %v670_v3  ;;  %v1882_v12 = vld [vmem:[#allocation8] sm:$0xff]   ;;  %v677_v15 = vld [vmem:[#allocation2 + $0x48] sm:$0xff]  ;;  %v678_v16 = vld [vmem:[#allocation2 + $0x50] sm:$0xff] }
 0x1ba   : > { %1637 = vmatprep.subr.bf16.mxu0 %v684_v4  ;;  %v675_v11 = vld [vmem:[#allocation2 + $0x38] sm:$0xff]  ;;  %1653 = vmatprep.mubr.bf16.mxu0 %v1882_v12  ;;  %v676_v14 = vld [vmem:[#allocation2 + $0x40] sm:$0xff]  ;;  %v1891_v20 = vld [vmem:[%s2430_s12 + $0x8] sm:$0xff]  }
 0x1bb   : > { %1638 = vmatpush3.bf16.msra.mxu0 %v684_v4  ;;  %v687_v13 = vpack.c.bf16 %v675_v11, %v674_v9  ;;  %v688_v17 = vpack.c.bf16 %v677_v15, %v676_v14  ;;  %v679_v18 = vld [vmem:[#allocation2 + $0x58] sm:$0xff]  ;;  %v1890_v19 = vld [vmem:[%s2430_s12] sm:$0xff]   ;;  %v1892_v24 = vld [vmem:[%s2430_s12 + $0x10] sm:$0xff]  }
 0x1bc   : > { %v673_v8 = vld [vmem:[#allocation2 + $0x28] sm:$0xff]  ;;  %1639 = vmatprep.subr.bf16.mxu0 %v685_v6  ;;  %v680_v21 = vld [vmem:[#allocation2 + $0x60] sm:$0xff]  ;;  %1669 = vmatprep.subr.bf16.mxu1 %v1890_v19  ;;  %v689_v22 = vpack.c.bf16 %v679_v18, %v678_v16  ;;  %v682_v26 = vld [vmem:[#allocation2 + $0x70] sm:$0xff] }
 0x1bd   : > { %v686_v10 = vpack.c.bf16 %v673_v8, %v672_v7  ;;  %v681_v23 = vld [vmem:[#allocation2 + $0x68] sm:$0xff]  ;;  %1670 = vmatpush3.bf16.msra.mxu1 %v1890_v19  ;;  %v683_v27 = vld [vmem:[#allocation2 + $0x78] sm:$0xff]  ;;  %v1894_v30 = vld [vmem:[%s2430_s12 + $0x20] sm:$0xff]  }
 0x1be   : > { %1671 = vmatprep.subr.bf16.mxu1 %v1891_v20  ;;  %v690_v25 = vpack.c.bf16 %v681_v23, %v680_v21  ;;  %v1893_v28 = vld [vmem:[%s2430_s12 + $0x18] sm:$0xff]   ;;  %v691_v29 = vpack.c.bf16 %v683_v27, %v682_v26  ;;  %v1883_v31 = vld [vmem:[#allocation8 + $0x8] sm:$0xff]   ;;  %v1884_v32 = vld [vmem:[#allocation8 + $0x10] sm:$0xff]  }
 0x1bf   : > { %1640 = vmatpush3.bf16.msra.mxu0 %v685_v6  ;;  %v1885_v33 = vld [vmem:[#allocation8 + $0x18] sm:$0xff]   ;;  %v1886_v34 = vld [vmem:[#allocation8 + $0x20] sm:$0xff]   ;;  %v1887_v35 = vld [vmem:[#allocation8 + $0x28] sm:$0xff]  }
 0x1c0   : > { %1641 = vmatprep.subr.bf16.mxu0 %v686_v10  ;;  %v1888_v36 = vld [vmem:[#allocation8 + $0x30] sm:$0xff]   ;;  %v1889_v37 = vld [vmem:[#allocation8 + $0x38] sm:$0xff]   ;;  %v1895_v38 = vld [vmem:[%s2430_s12 + $0x28] sm:$0xff]  }
 0x1c1   : > { %1672 = vmatpush3.bf16.msra.mxu1 %v1891_v20  ;;  %v1896_v39 = vld [vmem:[%s2430_s12 + $0x30] sm:$0xff]   ;;  %v1897_v40 = vld [vmem:[%s2430_s12 + $0x38] sm:$0xff]   ;;  %v853_v42 = vld [vmem:[#allocation3] sm:$0xff] }
 0x1c2   : > { %1673 = vmatprep.subr.bf16.mxu1 %v1892_v24  ;;  %v855_v41 = vld [vmem:[#allocation3 + $0x10] sm:$0xff]  ;;  %v856_v44 = vld [vmem:[#allocation3 + $0x18] sm:$0xff]  ;;  %v854_v47 = vld [vmem:[#allocation3 + $0x8] sm:$0xff] }
 0x1c3   : > { %1642 = vmatpush3.bf16.msra.mxu0 %v686_v10  ;;  %v859_v57 = vld [vmem:[#allocation3 + $0x30] sm:$0xff]  ;;  %v857_v59 = vld [vmem:[#allocation3 + $0x20] sm:$0xff]  ;;  %v860_v63 = vld [vmem:[#allocation3 + $0x38] sm:$0xff] }
 0x1c4   : > { %1643 = vmatprep.subr.bf16.mxu0 %v687_v13  ;;  %v858_v3 = vld [vmem:[#allocation3 + $0x28] sm:$0xff]  ;;  %v863_v15 = vld [vmem:[#allocation3 + $0x50] sm:$0xff]  ;;  %v864_v21 = vld [vmem:[#allocation3 + $0x58] sm:$0xff] }
 0x1c5   : > { %1674 = vmatpush3.bf16.msra.mxu1 %v1892_v24 }
 0x1c6   : > { %1675 = vmatprep.subr.bf16.mxu1 %v1893_v28 }
 0x1c7   : > { %1644 = vmatpush3.bf16.msra.mxu0 %v687_v13 }
 0x1c8   : > { %1645 = vmatprep.subr.bf16.mxu0 %v688_v17 }
 0x1c9   : > { %1676 = vmatpush3.bf16.msra.mxu1 %v1893_v28 }
 0x1ca   : > { %1677 = vmatprep.subr.bf16.mxu1 %v1894_v30 }
 0x1cb   : > { %1646 = vmatpush3.bf16.msra.mxu0 %v688_v17  ;;  %v861_v17 = vld [vmem:[#allocation3 + $0x40] sm:$0xff] }
 0x1cc   : > { %1647 = vmatprep.subr.bf16.mxu0 %v689_v22 }
 0x1cd   : > { %1678 = vmatpush3.bf16.msra.mxu1 %v1894_v30 }
 0x1ce   : > { %1679 = vmatprep.subr.bf16.mxu1 %v1895_v38 }
 0x1cf   : > { %1648 = vmatpush3.bf16.msra.mxu0 %v689_v22 }
 0x1d0   : > { %1649 = vmatprep.subr.bf16.mxu0 %v690_v25 }
 0x1d1   : > { %1680 = vmatpush3.bf16.msra.mxu1 %v1895_v38 }
 0x1d2   : > { %1681 = vmatprep.subr.bf16.mxu1 %v1896_v39 }
 0x1d3   : > { %1650 = vmatpush3.bf16.msra.mxu0 %v690_v25  ;;  %v862_v25 = vld [vmem:[#allocation3 + $0x48] sm:$0xff] }
 0x1d4   : > { %1651 = vmatprep.subr.bf16.mxu0 %v691_v29 }
 0x1d5   : > { %1682 = vmatpush3.bf16.msra.mxu1 %v1896_v39  ;;  %v865_v39 = vld [vmem:[#allocation3 + $0x60] sm:$0xff] }
 0x1d6   : > { %1683 = vmatprep.subr.bf16.mxu1 %v1897_v40 }
 0x1d7   : > { %1652 = vmatpush3.bf16.msra.mxu0 %v691_v29 }
 0x1d9   : > { %1684 = vmatpush3.bf16.msra.mxu1 %v1897_v40 }
 0x1da   : > { %1654 = vmatmul.mubr.bf16.vlgmr.msra.gmra.mrb[0].mxu0 %v1883_v31 }
 0x1db   : > { %1657 = vmatprep.mubr.bf16.mxu0 %v1884_v32 }
 0x1e2   : > { %1658 = vmatmul.mubr.bf16.gmra.mrb[4].mxu0 %v1885_v33 }
 0x1e3   : > { %1661 = vmatprep.mubr.bf16.mxu0 %v1886_v34 }
 0x1ea   : > { %1662 = vmatmul.mubr.bf16.gmra.mrb[8].mxu0 %v1887_v35 }
 0x1eb   : > { %1665 = vmatprep.mubr.bf16.mxu0 %v1888_v36 }
 0x1f2   : > { %1666 = vmatmul.mubr.bf16.gmra.mrb[12].mxu0 %v1889_v37  ;;  %v867_v37 = vld [vmem:[#allocation3 + $0x70] sm:$0xff] }
 0x2ad   : > { %v1655_v43 = vpop.f32.mrb[0].mxu0 }
 0x2ae   : > { %v871_v45 = vsub.f32 %v855_v41, %v1655_v43  ;;  %v790_v46 = vpop.f32.mrb[1].mxu0 }
 0x2af   : > { %v869_v48 = vsub.f32 %v853_v42, %v790_v46  ;;  %v1656_v49 = vpop.f32.mrb[2].mxu0 }
 0x2b0   : > { %v872_v50 = vsub.f32 %v856_v44, %v1656_v49  ;;  %v793_v51 = vpop.f32.mrb[3].mxu0  ;;  %v887_v54 = vmul.f32 0.1, %v871_v45 }
 0x2b1   : > { %v885_v52 = vmul.f32 0.1, %v869_v48  ;;  %v870_v53 = vsub.f32 %v854_v47, %v793_v51  ;;  %v866_v47 = vld [vmem:[#allocation3 + $0x68] sm:$0xff] }
 0x2b2   : > { %v888_v55 = vmul.f32 0.1, %v872_v50  ;;  %v2459_v0 = vadd.f32 %v1655_v43, %v887_v54  ;;  %v868_v43 = vld [vmem:[#allocation3 + $0x78] sm:$0xff] }
 0x2b3   : > { %v886_v56 = vmul.f32 0.1, %v870_v53  ;;  %v2455_v60 = vadd.f32 %v885_v52, %v790_v46 }
 0x2b4   : > { %v2453_v58 = vadd.f32 %v1656_v49, %v888_v55 }
 0x2b5   : > { %v2457_v61 = vadd.f32 %v886_v56, %v793_v51  ;;  %v1659_v62 = vpop.f32.mrb[4].mxu0 }
 0x2b6   : > { %v875_v1 = vsub.f32 %v859_v57, %v1659_v62  ;;  %v806_v2 = vpop.f32.mrb[5].mxu0  ;;  %v918_v9 = vpack.c.bf16 %v2453_v58, %v2459_v0 }
 0x2b7   : > { %v873_v4 = vsub.f32 %v857_v59, %v806_v2  ;;  %v1660_v5 = vpop.f32.mrb[6].mxu0  ;;  %v917_v6 = vpack.c.bf16 %v2457_v61, %v2455_v60 }
 0x2b8   : > { %v876_v7 = vsub.f32 %v860_v63, %v1660_v5  ;;  %v809_v8 = vpop.f32.mrb[7].mxu0  ;;  %v891_v12 = vmul.f32 0.1, %v875_v1 }
 0x2b9   : > { %v889_v10 = vmul.f32 0.1, %v873_v4  ;;  %v874_v11 = vsub.f32 %v858_v3, %v809_v8  ;;  %1685 = vmatprep.mubr.bf16.mxu1 %v917_v6  ;;  %v2502_v6 = vstv %s667_s30 }
 0x2ba   : > { %v892_v13 = vmul.f32 0.1, %v876_v7  ;;  %1686 = vmatmul.mubr.bf16.vlgmr.msra.gmra.mrb[0].mxu1 %v918_v9  ;;  %v2471_v22 = vadd.f32 %v1659_v62, %v891_v12 }
 0x2bb   : > { %v890_v14 = vmul.f32 0.1, %v874_v11  ;;  %v2467_v18 = vadd.f32 %v889_v10, %v806_v2 }
 0x2bc   : > { %v2465_v16 = vadd.f32 %v1660_v5, %v892_v13 }
 0x2bd   : > { %v2469_v19 = vadd.f32 %v890_v14, %v809_v8  ;;  %v1663_v20 = vpop.f32.mrb[8].mxu0 }
 0x2be   : > { %v879_v23 = vsub.f32 %v863_v15, %v1663_v20  ;;  %v822_v24 = vpop.f32.mrb[9].mxu0  ;;  %v920_v31 = vpack.c.bf16 %v2465_v16, %v2471_v22 }
 0x2bf   : > { %v877_v26 = vsub.f32 %v861_v17, %v822_v24  ;;  %v1664_v27 = vpop.f32.mrb[10].mxu0  ;;  %v919_v28 = vpack.c.bf16 %v2469_v19, %v2467_v18 }
 0x2c0   : > { %v880_v29 = vsub.f32 %v864_v21, %v1664_v27  ;;  %v825_v30 = vpop.f32.mrb[11].mxu0  ;;  %v895_v34 = vmul.f32 0.1, %v879_v23 }
 0x2c1   : > { %v893_v32 = vmul.f32 0.1, %v877_v26  ;;  %v878_v33 = vsub.f32 %v862_v25, %v825_v30  ;;  %1689 = vmatprep.mubr.bf16.mxu1 %v919_v28 }
 0x2c2   : > { %v896_v35 = vmul.f32 0.1, %v880_v29  ;;  %1690 = vmatmul.mubr.bf16.gmra.mrb[4].mxu1 %v920_v31  ;;  %v2483_v44 = vadd.f32 %v1663_v20, %v895_v34 }
 0x2c3   : > { %v894_v36 = vmul.f32 0.1, %v878_v33  ;;  %v2479_v40 = vadd.f32 %v893_v32, %v822_v24 }
 0x2c4   : > { %v2477_v38 = vadd.f32 %v1664_v27, %v896_v35 }
 0x2c5   : > { %v2481_v41 = vadd.f32 %v894_v36, %v825_v30  ;;  %v1667_v42 = vpop.f32.mrb[12].mxu0 }
 0x2c6   : > { %v883_v45 = vsub.f32 %v867_v37, %v1667_v42  ;;  %v838_v46 = vpop.f32.mrb[13].mxu0  ;;  %v922_v53 = vpack.c.bf16 %v2477_v38, %v2483_v44 }
 0x2c7   : > { %v881_v48 = vsub.f32 %v865_v39, %v838_v46  ;;  %v1668_v49 = vpop.f32.mrb[14].mxu0  ;;  %v921_v50 = vpack.c.bf16 %v2481_v41, %v2479_v40 }
 0x2c8   : > { %v884_v51 = vsub.f32 %v868_v43, %v1668_v49  ;;  %v841_v52 = vpop.f32.mrb[15].mxu0  ;;  %v899_v56 = vmul.f32 0.1, %v883_v45 }
 0x2c9   : > { %v897_v54 = vmul.f32 0.1, %v881_v48  ;;  %v882_v55 = vsub.f32 %v866_v47, %v841_v52  ;;  %1693 = vmatprep.mubr.bf16.mxu1 %v921_v50 }
 0x2ca   : > { %v900_v57 = vmul.f32 0.1, %v884_v51  ;;  %1694 = vmatmul.mubr.bf16.gmra.mrb[8].mxu1 %v922_v53  ;;  %v2495_v2 = vadd.f32 %v1667_v42, %v899_v56 }
 0x2cb   : > { %v898_v59 = vmul.f32 0.1, %v882_v55  ;;  %v2491_v63 = vadd.f32 %v897_v54, %v838_v46 }
 0x2cc   : > { %v2489_v62 = vadd.f32 %v1668_v49, %v900_v57 }
 0x2cd   : > { %v2493_v1 = vadd.f32 %v898_v59, %v841_v52 }
 0x2ce   : > { %v924_v4 = vpack.c.bf16 %v2489_v62, %v2495_v2 }
 0x2cf   : > { %v923_v3 = vpack.c.bf16 %v2493_v1, %v2491_v63 }
 0x2d1   : > { %1697 = vmatprep.mubr.bf16.mxu1 %v923_v3 }
 0x2d2   : > { %1698 = vmatmul.mubr.bf16.gmra.mrb[12].mxu1 %v924_v4 }
 0x38d   : > { %v1687_v5 = vpop.f32.mrb[0].mxu1 }
 0x38e   : > { %v1088_v7 = vsub.f32 %v1687_v5, %v2459_v0  ;;  %v1023_v8 = vpop.f32.mrb[1].mxu1 }
 0x38f   : > { %v1086_v9 = vsub.f32 %v1023_v8, %v2455_v60  ;;  %v1688_v10 = vpop.f32.mrb[2].mxu1 }
 0x390   : > { %v1105_v11 = vmul.f32 %v2502_v6, %v1088_v7  ;;  %v1089_v12 = vsub.f32 %v1688_v10, %v2453_v58  ;;  %v1026_v13 = vpop.f32.mrb[3].mxu1 }
 0x391   : > { %v1103_v14 = vmul.f32 %v2502_v6, %v1086_v9  ;;  %v1087_v15 = vsub.f32 %v1026_v13, %v2457_v61 }
 0x392   : > { %v2511_v17 = vadd.f32 %v1105_v11, %v2459_v0  ;;  %v1106_v20 = vmul.f32 %v2502_v6, %v1089_v12 }
 0x393   : > { %v2515_v21 = vadd.f32 %v1103_v14, %v2455_v60  ;;  %v1104_v23 = vmul.f32 %v2502_v6, %v1087_v15 }
 0x394   : > { %v1137_v24 = vmax.f32 %v2511_v17, 0.0  ;;  %v2520_v25 = vadd.f32 %v1106_v20, %v2453_v58 }
 0x395   : > { %v1135_v26 = vmax.f32 %v2515_v21, 0.0  ;;  %v2524_v27 = vadd.f32 %v1104_v23, %v2457_v61  ;;  %v1691_v28 = vpop.f32.mrb[4].mxu1  ;;  %v1902_v21 = vld [vmem:[#allocation14 + $0x20] sm:$0xff] (!%p1526_p7)  }
 0x396   : > { %1153 = vst [vmem:[#allocation2 + $0x10] sm:$0xff] %v1137_v24  ;;  %v1138_v0 = vmax.f32 %v2520_v25, 0.0  ;;  %v1092_v60 = vsub.f32 %v1691_v28, %v2471_v22  ;;  %v1039_v29 = vpop.f32.mrb[5].mxu1  ;;  %v1527_v25 = vld [vmem:[%s2679_s7] ss:$0 sm:$0xff] (!%p1526_p7) }
 0x397   : > { %1151 = vst [vmem:[#allocation2] sm:$0xff] %v1135_v26  ;;  %v1136_v58 = vmax.f32 %v2524_v27, 0.0  ;;  %v1090_v30 = vsub.f32 %v1039_v29, %v2467_v18  ;;  %v1692_v31 = vpop.f32.mrb[6].mxu1  ;;  %v1904_v27 = vld [vmem:[#allocation14 + $0x30] sm:$0xff] (!%p1526_p7)  }
 0x398   : > { %1154 = vst [vmem:[#allocation2 + $0x18] sm:$0xff] %v1138_v0  ;;  %v1109_v61 = vmul.f32 %v2502_v6, %v1092_v60  ;;  %v1093_v32 = vsub.f32 %v1692_v31, %v2465_v16  ;;  %v1042_v33 = vpop.f32.mrb[7].mxu1 }
 0x399   : > { %1152 = vst [vmem:[#allocation2 + $0x8] sm:$0xff] %v1136_v58  ;;  %v1107_v34 = vmul.f32 %v2502_v6, %v1090_v30  ;;  %v1091_v35 = vsub.f32 %v1042_v33, %v2469_v19 }
 0x39a   : > { %v2543_v36 = vadd.f32 %v1109_v61, %v2471_v22  ;;  %v1110_v37 = vmul.f32 %v2502_v6, %v1093_v32 }
 0x39b   : > { %v2547_v39 = vadd.f32 %v1107_v34, %v2467_v18  ;;  %v1108_v42 = vmul.f32 %v2502_v6, %v1091_v35  ;;  %v1900_v34 = vld [vmem:[#allocation14 + $0x10] sm:$0xff] (!%p1526_p7)   ;;  %v1901_v35 = vld [vmem:[#allocation14 + $0x18] sm:$0xff] (!%p1526_p7)  }
 0x39c   : > { %v1141_v43 = vmax.f32 %v2543_v36, 0.0  ;;  %v2552_v45 = vadd.f32 %v1110_v37, %v2465_v16  ;;  %v1172_v37 = vpack.c.bf16 (!%p1526_p7), %v1138_v0, %v1137_v24 }
 0x39d   : > { %v1139_v46 = vmax.f32 %v2547_v39, 0.0  ;;  %v2556_v47 = vadd.f32 %v1108_v42, %v2469_v19  ;;  %v1695_v48 = vpop.f32.mrb[8].mxu1 }
 0x39e   : > { %1157 = vst [vmem:[#allocation2 + $0x30] sm:$0xff] %v1141_v43  ;;  %v1142_v22 = vmax.f32 %v2552_v45, 0.0  ;;  %v1096_v18 = vsub.f32 %v1695_v48, %v2483_v44  ;;  %v1055_v49 = vpop.f32.mrb[9].mxu1 }
 0x39f   : > { %1155 = vst [vmem:[#allocation2 + $0x20] sm:$0xff] %v1139_v46  ;;  %v1140_v16 = vmax.f32 %v2556_v47, 0.0  ;;  %v1094_v50 = vsub.f32 %v1055_v49, %v2479_v40  ;;  %v1696_v51 = vpop.f32.mrb[10].mxu1 }
 0x3a0   : > { %1158 = vst [vmem:[#allocation2 + $0x38] sm:$0xff] %v1142_v22  ;;  %v1113_v19 = vmul.f32 %v2502_v6, %v1096_v18  ;;  %v1097_v52 = vsub.f32 %v1696_v51, %v2477_v38  ;;  %v1058_v53 = vpop.f32.mrb[11].mxu1  ;;  %v1174_v17 = vpack.c.bf16 (!%p1526_p7), %v1142_v22, %v1141_v43 }
 0x3a1   : > { %1156 = vst [vmem:[#allocation2 + $0x28] sm:$0xff] %v1140_v16  ;;  %v1111_v54 = vmul.f32 %v2502_v6, %v1094_v50  ;;  %v1095_v55 = vsub.f32 %v1058_v53, %v2481_v41  ;;  %v1173_v48 = vpack.c.bf16 (!%p1526_p7), %v1140_v16, %v1139_v46 }
 0x3a2   : > { %v2575_v56 = vadd.f32 %v1113_v19, %v2483_v44  ;;  %v1114_v57 = vmul.f32 %v2502_v6, %v1097_v52 }
 0x3a3   : > { %v1127_v59 = vadd.f32 %v1111_v54, %v2479_v40  ;;  %v1112_v3 = vmul.f32 %v2502_v6, %v1095_v55 }
 0x3a4   : > { %v1145_v4 = vmax.f32 %v2575_v56, 0.0  ;;  %v2582_v5 = vadd.f32 %v1114_v57, %v2477_v38 }
 0x3a5   : > { %v1143_v7 = vmax.f32 %v1127_v59, 0.0  ;;  %v1128_v8 = vadd.f32 %v1112_v3, %v2481_v41  ;;  %v1699_v9 = vpop.f32.mrb[12].mxu1 }
 0x3a6   : > { %1161 = vst [vmem:[#allocation2 + $0x50] sm:$0xff] %v1145_v4  ;;  %v1146_v44 = vmax.f32 %v2582_v5, 0.0  ;;  %v1100_v10 = vsub.f32 %v1699_v9, %v2495_v2  ;;  %v1071_v11 = vpop.f32.mrb[13].mxu1 }
 0x3a7   : > { %1159 = vst [vmem:[#allocation2 + $0x40] sm:$0xff] %v1143_v7  ;;  %v1144_v40 = vmax.f32 %v1128_v8, 0.0  ;;  %v1098_v12 = vsub.f32 %v1071_v11, %v2491_v63  ;;  %v1700_v13 = vpop.f32.mrb[14].mxu1 }
 0x3a8   : > { %1162 = vst [vmem:[#allocation2 + $0x58] sm:$0xff] %v1146_v44  ;;  %v1117_v38 = vmul.f32 %v2502_v6, %v1100_v10  ;;  %v1101_v41 = vsub.f32 %v1700_v13, %v2489_v62  ;;  %v1074_v14 = vpop.f32.mrb[15].mxu1  ;;  %v1176_v42 = vpack.c.bf16 (!%p1526_p7), %v1146_v44, %v1145_v4 }
 0x3a9   : > { %1160 = vst [vmem:[#allocation2 + $0x48] sm:$0xff] %v1144_v40  ;;  %v1115_v15 = vmul.f32 %v2502_v6, %v1098_v12  ;;  %v1099_v20 = vsub.f32 %v1074_v14, %v2493_v1 }
 0x3aa   : > { %v2597_v23 = vadd.f32 %v1117_v38, %v2495_v2  ;;  %v1118_v28 = vmul.f32 %v2502_v6, %v1101_v41 }
 0x3ab   : > { %v1131_v60 = vadd.f32 %v1115_v15, %v2491_v63  ;;  %v1116_v29 = vmul.f32 %v2502_v6, %v1099_v20  ;;  %1170 = sbr.rel (%p1526_p7) target bundleno = 1198 (0x4ae), region = 84  ;;  %v1898_v63 = vld [vmem:[#allocation14] sm:$0xff] (!%p1526_p7)   ;;  %v1899_v6 = vld [vmem:[#allocation14 + $0x8] sm:$0xff] (!%p1526_p7)  }
 0x3ac   : > { %v1149_v30 = vmax.f32 %v2597_v23, 0.0  ;;  %v2604_v31 = vadd.f32 %v1118_v28, %v2489_v62  ;;  %v1171_v62 = vpack.c.bf16 (!%p1526_p7), %v1136_v58, %v1135_v26  ;;  %1701 = vmatprep.subr.bf16.mxu0 (!%p1526_p7), %v1898_v63  ;;  %1749 = vmatprep.subr.bf16.mxu1 (!%p1526_p7), %v1898_v63  ;;  %v1903_v26 = vld [vmem:[#allocation14 + $0x28] sm:$0xff] (!%p1526_p7)   ;;  %v1905_v58 = vld [vmem:[#allocation14 + $0x38] sm:$0xff] (!%p1526_p7)  }
 0x3ad   : > { %v1147_v61 = vmax.f32 %v1131_v60, 0.0  ;;  %v1132_v32 = vadd.f32 %v1116_v29, %v2493_v1  ;;  %v1175_v1 = vpack.c.bf16 (!%p1526_p7), %v1144_v40, %v1143_v7  ;;  %1702 = vmatpush3.bf16.msra.mxu0 (!%p1526_p7), %v1898_v63  ;;  %1757 = vmatpush3.bf16.msra.mxu1 (!%p1526_p7), %v1898_v63 }
 0x3ae   : > { %1165 = vst [vmem:[#allocation2 + $0x70] sm:$0xff] %v1149_v30  ;;  %v1150_v2 = vmax.f32 %v2604_v31, 0.0  ;;  %1703 = vmatprep.subr.bf16.mxu0 (!%p1526_p7), %v1899_v6  ;;  %1750 = vmatprep.subr.bf16.mxu1 (!%p1526_p7), %v1899_v6 }
 0x3af   : > { %1163 = vst [vmem:[#allocation2 + $0x60] sm:$0xff] %v1147_v61  ;;  %v1148_v33 = vmax.f32 %v1132_v32, 0.0  ;;  %1717 = vmatprep.mubr.bf16.mxu0 (!%p1526_p7), %v1171_v62  ;;  %1725 = vmatprep.mubr.bf16.mxu1 (!%p1526_p7), %v1175_v1 }
 0x3b0   : > { %1166 = vst [vmem:[#allocation2 + $0x78] sm:$0xff] %v1150_v2  ;;  %v1178_v24 = vpack.c.bf16 (!%p1526_p7), %v1150_v2, %v1149_v30 }
 0x3b1   : > { %1164 = vst [vmem:[#allocation2 + $0x68] sm:$0xff] %v1148_v33  ;;  %1704 = vmatpush3.bf16.msra.mxu0 (!%p1526_p7), %v1899_v6  ;;  %1758 = vmatpush3.bf16.msra.mxu1 (!%p1526_p7), %v1899_v6  ;;  %v1177_v18 = vpack.c.bf16 (!%p1526_p7), %v1148_v33, %v1147_v61 }
 0x3b2   : > { %1705 = vmatprep.subr.bf16.mxu0 %v1900_v34  ;;  %1751 = vmatprep.subr.bf16.mxu1 %v1900_v34 }
 0x3b5   : > { %1706 = vmatpush3.bf16.msra.mxu0 %v1900_v34  ;;  %1759 = vmatpush3.bf16.msra.mxu1 %v1900_v34 }
 0x3b6   : > { %1707 = vmatprep.subr.bf16.mxu0 %v1901_v35  ;;  %1752 = vmatprep.subr.bf16.mxu1 %v1901_v35 }
 0x3b9   : > { %1708 = vmatpush3.bf16.msra.mxu0 %v1901_v35  ;;  %1760 = vmatpush3.bf16.msra.mxu1 %v1901_v35 }
 0x3ba   : > { %1709 = vmatprep.subr.bf16.mxu0 %v1902_v21  ;;  %1753 = vmatprep.subr.bf16.mxu1 %v1902_v21 }
 0x3bd   : > { %1710 = vmatpush3.bf16.msra.mxu0 %v1902_v21  ;;  %1761 = vmatpush3.bf16.msra.mxu1 %v1902_v21 }
 0x3be   : > { %1711 = vmatprep.subr.bf16.mxu0 %v1903_v26  ;;  %1754 = vmatprep.subr.bf16.mxu1 %v1903_v26 }
 0x3c1   : > { %1712 = vmatpush3.bf16.msra.mxu0 %v1903_v26  ;;  %1762 = vmatpush3.bf16.msra.mxu1 %v1903_v26 }
 0x3c2   : > { %1713 = vmatprep.subr.bf16.mxu0 %v1904_v27  ;;  %1755 = vmatprep.subr.bf16.mxu1 %v1904_v27 }
 0x3c5   : > { %1714 = vmatpush3.bf16.msra.mxu0 %v1904_v27  ;;  %1763 = vmatpush3.bf16.msra.mxu1 %v1904_v27 }
 0x3c6   : > { %1715 = vmatprep.subr.bf16.mxu0 %v1905_v58  ;;  %1756 = vmatprep.subr.bf16.mxu1 %v1905_v58 }
 0x3c9   : > { %1716 = vmatpush3.bf16.msra.mxu0 %v1905_v58  ;;  %1764 = vmatpush3.bf16.msra.mxu1 %v1905_v58 }
 0x3cc   : > { %1718 = vmatmul.mubr.bf16.vlgmr.msra.gmra.mrb[0].mxu0 %v1172_v37  ;;  %1726 = vmatmul.mubr.bf16.vlgmr.msra.gmra.mrb[0].mxu1 %v1176_v42 }
 0x3cd   : > { %1721 = vmatprep.mubr.bf16.mxu0 %v1173_v48  ;;  %1729 = vmatprep.mubr.bf16.mxu1 %v1177_v18 }
 0x3d4   : > { %1722 = vmatmul.mubr.bf16.gmra.mrb[4].mxu0 %v1174_v17  ;;  %1730 = vmatmul.mubr.bf16.gmra.mrb[4].mxu1 %v1178_v24 }
 0x49f   : > { %v1719_v0 = vpop.f32.mrb[0].mxu0  ;;  %v1727_v39 = vpop.f32.mrb[0].mxu1 }
 0x4a0   : > { %v1293_v46 = vadd.f32 %v1719_v0, %v1527_v25  ;;  %v1325_v47 = vadd.f32 %v1727_v39, %v1527_v25  ;;  %v1284_v49 = vpop.f32.mrb[1].mxu0  ;;  %v1316_v16 = vpop.f32.mrb[1].mxu1 }
 0x4a1   : > { %v1285_v50 = vadd.f32 %v1527_v25, %v1284_v49  ;;  %v1317_v36 = vadd.f32 %v1527_v25, %v1316_v16  ;;  %v1720_v51 = vpop.f32.mrb[2].mxu0  ;;  %v1728_v45 = vpop.f32.mrb[2].mxu1 }
 0x4a2   : > { %1349 = vst [vmem:[#allocation15 + $0x10] sm:$0xff] %v1293_v46  ;;  %1357 = vst [vmem:[#allocation15 + $0x50] sm:$0xff] %v1325_v47  ;;  %v1296_v43 = vadd.f32 %v1720_v51, %v1527_v25  ;;  %v1328_v22 = vadd.f32 %v1728_v45, %v1527_v25  ;;  %v1287_v19 = vpop.f32.mrb[3].mxu0  ;;  %v1319_v52 = vpop.f32.mrb[3].mxu1 }
 0x4a3   : > { %1347 = vst [vmem:[#allocation15] sm:$0xff] %v1285_v50  ;;  %1355 = vst [vmem:[#allocation15 + $0x40] sm:$0xff] %v1317_v36  ;;  %v1288_v53 = vadd.f32 %v1527_v25, %v1287_v19  ;;  %v1320_v54 = vadd.f32 %v1527_v25, %v1319_v52 }
 0x4a4   : > { %1350 = vst [vmem:[#allocation15 + $0x18] sm:$0xff] %v1296_v43  ;;  %1358 = vst [vmem:[#allocation15 + $0x58] sm:$0xff] %v1328_v22 }
 0x4a5   : > { %1348 = vst [vmem:[#allocation15 + $0x8] sm:$0xff] %v1288_v53  ;;  %1356 = vst [vmem:[#allocation15 + $0x48] sm:$0xff] %v1320_v54 }
 0x4a7   : > { %v1723_v55 = vpop.f32.mrb[4].mxu0  ;;  %v1731_v56 = vpop.f32.mrb[4].mxu1 }
 0x4a8   : > { %v1309_v57 = vadd.f32 %v1723_v55, %v1527_v25  ;;  %v1341_v59 = vadd.f32 %v1731_v56, %v1527_v25  ;;  %v1300_v3 = vpop.f32.mrb[5].mxu0  ;;  %v1332_v4 = vpop.f32.mrb[5].mxu1 }
 0x4a9   : > { %v1301_v5 = vadd.f32 %v1527_v25, %v1300_v3  ;;  %v1333_v7 = vadd.f32 %v1527_v25, %v1332_v4  ;;  %v1724_v8 = vpop.f32.mrb[6].mxu0  ;;  %v1732_v9 = vpop.f32.mrb[6].mxu1 }
 0x4aa   : > { %1353 = vst [vmem:[#allocation15 + $0x30] sm:$0xff] %v1309_v57  ;;  %1361 = vst [vmem:[#allocation15 + $0x70] sm:$0xff] %v1341_v59  ;;  %v1312_v44 = vadd.f32 %v1724_v8, %v1527_v25  ;;  %v1344_v10 = vadd.f32 %v1732_v9, %v1527_v25  ;;  %v1303_v11 = vpop.f32.mrb[7].mxu0  ;;  %v1335_v40 = vpop.f32.mrb[7].mxu1 }
 0x4ab   : > { %1351 = vst [vmem:[#allocation15 + $0x20] sm:$0xff] %v1301_v5  ;;  %1359 = vst [vmem:[#allocation15 + $0x60] sm:$0xff] %v1333_v7  ;;  %v1304_v12 = vadd.f32 %v1527_v25, %v1303_v11  ;;  %v1336_v13 = vadd.f32 %v1527_v25, %v1335_v40 }
 0x4ac   : > { %1354 = vst [vmem:[#allocation15 + $0x38] sm:$0xff] %v1312_v44  ;;  %1362 = vst [vmem:[#allocation15 + $0x78] sm:$0xff] %v1344_v10 }
 0x4ad   : > { %1352 = vst [vmem:[#allocation15 + $0x28] sm:$0xff] %v1304_v12  ;;  %1360 = vst [vmem:[#allocation15 + $0x68] sm:$0xff] %v1336_v13 }
 0x4ae PF: > { %p1822_p4 = scmp.eq.s32.totalorder %s2218_s9, 1  ;;  %s2151_s21 = smov [#allocation15]  }
 0x4af   : > { %s1369_s18 = sshll.u32 %s2151_s21, 4  ;;  %s1370_s18 = int_to_ptr.vmem [resolvable:$true] %s1369_s18 }
 0x4b0   : > { %s2061_s23 = scalar_lea.vmem %s1370_s18, 2048  ;;  %p2068_p6 = scmp.lt.s32.totalorder %s1370_s18, %s1370_s18 }
 0x4b1   : > { %p2062_p5 = scmp.ne.s32.totalorder %s1370_s18, %s2061_s23  ;;  %p2069_p9 = scmp.lt.s32.totalorder %s2061_s23, %s2061_s23 }
 0x4b3   : > { %p2063_p3 = pnand %p2062_p5, %p1822_p4  ;;  %p2070_p10 = por %p2069_p9, %p2068_p6 }
 0x4b5   : > { %p2064_p1 = pneg %p2063_p3 }
 0x4b7   : > { %p2071_p11 = pnand %p2070_p10, %p2064_p1 }
 0x4b9   : > { %2074 = shalt.err (!%p2071_p11)
}
 0x4ba   : > { %s2075_s24 = scalar_lea.hbm %s2680_s8, 2048 }
 0x4bb   : > { %p2076_p8 = scmp.ne.s32.totalorder %s2680_s8, %s2075_s24  ;;  %p2081_p0 = scmp.lt.u32.totalorder %s2075_s24, %s2680_s8 }
 0x4bd   : > { %p2077_p12 = pnand %p2076_p8, %p1822_p4 }
 0x4bf   : > { %p2078_p13 = pneg %p2077_p12 }
 0x4c1   : > { %p2083_p2 = pnand %p2081_p0, %p2078_p13 }
 0x4c3   : > { %2086 = shalt.err (!%p2083_p2)
}
 0x4c4   : > { %s2152_s17 = smov 128   ;;  %s2153_s12 = smov 8  }
 0x4c5   : > { %1788 = dma.vmem_to_hbm [thread:$0]  (%p1822_p4), %s1370_s18, 2048, %s2680_s8, [#allocation6], %s2152_s17, %s2152_s17, %s2153_s12  }
 0x4c6   : > { %2124 = dma.done.wait (%p1822_p4), [#allocation6], 2048  }
 0x4c7   : > { %2126 = vsyncadd (%p1822_p4), [#allocation6], 4294965248 }
 0x4c8 PF: > { %p22_p7 = scmp.ge.s32.totalorder %s2357_s22, 4   ;;  %s2703_s27 = smov %s2133_s28 }
 0x4c9   : > { %s2704_s28 = smov %s2137_s29  ;;  %s2705_s29 = smov %s2367_s15 }
 0x4ca   : > { %s2706_s30 = smov %s2357_s22  ;;  %24 = sbr.rel (!%p22_p7) target bundleno = 7 (0x7), region = 119 }
 0x4d1   :  { %1385 = vsyncpa [#allocation5], 1 }
 0x4d2   :  { %1387 = vsyncpa [#allocation5 + $0x1], 1 }
 0x4d3   :  { %1388 = vsyncpa [#allocation10], 1 }
 0x4d4   :  { %1389 = vsyncpa [#allocation13], 1 }
 0x4d5   :  { %1391 = vsyncpa [#allocation13 + $0x1], 1 }
 0x4d6   :  { %1392 = vsyncpa [#allocation6], 1 }
 0x4d7   :  { %1394 = vsyncpa [#allocation6 + $0x1], 1 }
 0x4d8   :  { %1395 = vsyncpa [#allocation7], 1 }
 0x4d9   :  { %1397 = vsyncpa [#allocation7 + $0x1], 1 }

</bundles_post_ra>
